<compile_context>
chip_gen: v5e
topology: v5e:2x2
jax: 0.10.0
libtpu: 0.0.40
codegen_flags: <defaults>
</compile_context>

<pallas_src>
import functools

import jax
import jax.numpy as jnp
from jax import lax
from jax.experimental import pallas as pl
from jax.experimental.pallas import tpu as pltpu


def _round_up(v, m):
    return (v + m - 1) // m * m


def _vmem_estimate(tm, tn, d_pad, in_bytes, n_col_tiles):
    row_bufs = 1 if n_col_tiles > 1 else 2            # Buffered(1) when k-axis is tiled
    xr = row_bufs * tm * d_pad * in_bytes              # row tile of x
    xc = 2 * tn * d_pad * in_bytes                     # column tile of x (double buffered)
    small = row_bufs * 2 * tm * 4 + 2 * 2 * tn * 4     # labels + norms, both layouts
    out = 2 * 8 * tm * 4                               # output block (double buffered)
    acc = 8 * tm * 4                                   # accumulator scratch
    temps = 5 * tn * tm * 4                            # gram / d2 / selects spill headroom
    return xr + xc + small + out + acc + temps


def _choose_tiles(n_pad, d_pad, in_bytes):
    """Pick (row tile tm, column tile tn) under a VMEM budget.

    tm is the reuse factor for the streamed column operand (HBM reads of x scale
    with n_pad/tm); tn == n_pad keeps the column operand resident (x streamed
    once).  Budget fits v7x's 64 MiB physical VMEM with headroom; the actual
    requirement is also exported via vmem_limit_bytes (covers v5e's 16 MiB
    scoped default).
    """
    budget = 40 * 1024 * 1024
    opts = []
    for c in (n_pad, 2048, 1024, 512, 256, 128):
        if c <= n_pad and n_pad % c == 0 and c not in opts:
            opts.append(c)

    best = None
    for tn in opts:
        n_col = n_pad // tn
        for tm in opts:
            if n_pad >= 256 and n_pad // tm < 2:
                continue                               # keep >=2 row tiles (v7x megacore)
            est = _vmem_estimate(tm, tn, d_pad, in_bytes, n_col)
            if est > budget:
                continue
            streams = n_pad // tm if n_col > 1 else 1  # HBM passes over x for the column side
            score = (streams, -min(tm, 512), -min(tn, 1024))
            if best is None or score < best[0]:
                best = (score, tm, tn, est)
    if best is None:                                    # enormous d_pad: minimal legal tiles
        tm = 128 if n_pad % 128 == 0 else n_pad
        tn = tm
        best = (None, tm, tn, _vmem_estimate(tm, tn, d_pad, in_bytes, n_pad // tn))
    return best[1], best[2], best[3]


def _triplet_stats_kernel(xr_ref, xc_ref, tr_ref, tc_ref, sqr_ref, sqc_ref,
                          out_ref, acc_ref, *, with_prec):
    """One (tn x tm) tile of the squared pairwise-distance matrix.

    The tile is transposed: sublanes = "other" samples (column tile), lanes =
    samples of the current row tile, so per-sample reductions are sublane
    reductions and the accumulator / output stay lane-dense.
    """
    tm = xr_ref.shape[0]          # row-tile size   (lane axis of the tile)
    tn = xc_ref.shape[0]          # column-tile size (sublane axis of the tile)
    i = pl.program_id(0)          # row tile    (parallel)
    k = pl.program_id(1)          # column tile (reduction / arbitrary)

    @pl.when(k == 0)
    def _init():
        # Row 0: hardest positive (max, id 0); rows 1[,2]: min accumulators (id +inf).
        row_id = lax.broadcasted_iota(jnp.int32, (8, tm), 0)
        if with_prec:
            min_rows = (row_id == 1) | (row_id == 2)
        else:
            min_rows = row_id == 1
        acc_ref[...] = jnp.where(min_rows, jnp.inf, 0.0).astype(jnp.float32)

    # Gram tile on the MXU; contract the embedding dim of both (bf16) operands
    # directly (no transpose), accumulate in f32.  Result: (tn, tm).
    gram = lax.dot_general(xc_ref[...], xr_ref[...],
                           dimension_numbers=(((1,), (1,)), ((), ())),
                           preferred_element_type=jnp.float32)
    # Squared distances only; sqrt happens once per sample in the wrapper.
    # Padded columns carry sq = +inf -> d2 = +inf -> never selected.
    d2 = jnp.maximum(sqc_ref[...] + sqr_ref[...] - 2.0 * gram, 0.0)   # (tn, tm)

    # Sentinel-padded labels: padded columns never equal any real label.
    same = tc_ref[...] == tr_ref[...]                                 # (tn,1)==(1,tm) -> (tn,tm)

    def _pos_selects(mask_pos):
        sel = (jnp.where(mask_pos, d2, 0.0),)          # feeds the max (hardest positive)
        if with_prec:
            sel = sel + (jnp.where(mask_pos, d2, jnp.inf),)  # feeds the min (closest positive)
        return sel

    def _with_diag(_):
        col_g = k * tn + lax.broadcasted_iota(jnp.int32, (tn, tm), 0)
        row_g = i * tm + lax.broadcasted_iota(jnp.int32, (tn, tm), 1)
        return _pos_selects(same & (col_g != row_g))

    def _no_diag(_):
        return _pos_selects(same)

    # Only tiles intersecting the diagonal pay for the self-exclusion iotas.
    diag_hits = (k * tn < (i + 1) * tm) & (i * tm < (k + 1) * tn)
    pos_sel = lax.cond(diag_hits, _with_diag, _no_diag, None)

    acc_ref[0:1, :] = jnp.maximum(
        acc_ref[0:1, :], jnp.max(pos_sel[0], axis=0, keepdims=True))
    acc_ref[1:2, :] = jnp.minimum(
        acc_ref[1:2, :],
        jnp.min(jnp.where(same, jnp.inf, d2), axis=0, keepdims=True))
    if with_prec:
        acc_ref[2:3, :] = jnp.minimum(
            acc_ref[2:3, :], jnp.min(pos_sel[1], axis=0, keepdims=True))

    @pl.when(k == pl.num_programs(1) - 1)
    def _finalize():
        out_ref[...] = acc_ref[...]      # single lane-dense full-block store


def triplet_loss(inputs, targets, margin=1.0, *, use_bf16=True, compute_prec=True):
    """inputs: (n, d) float, targets: (n,) or (n, 1) int labels.

    Returns (loss, metrics) matching TripletLoss(margin, sample=False).forward.
    """
    n, d = inputs.shape
    x = inputs.astype(jnp.float32)
    t = targets.astype(jnp.int32).reshape(n)

    # Pad samples / embedding dim to multiples of 128 (lane / MXU alignment).
    n_pad = _round_up(n, 128)
    d_pad = _round_up(d, 128)
    x_p = jnp.pad(x, ((0, n_pad - n), (0, d_pad - d)))

    # Squared norms in f32 (computed before any bf16 cast).
    sq = jnp.sum(x_p * x_p, axis=1)                       # (n_pad,)
    valid_row = jnp.arange(n_pad) < n
    sq_col = jnp.where(valid_row, sq, jnp.inf)            # +inf -> padded cols never selected

    # Sentinel label for padded entries: cannot alias any real label.
    sentinel = jnp.min(t) - 1
    t_p = jnp.concatenate(
        [t, jnp.broadcast_to(sentinel, (n_pad - n,))]).astype(jnp.int32)

    x_op = x_p.astype(jnp.bfloat16) if use_bf16 else x_p  # bf16 MXU operands, f32 accumulate
    in_bytes = 2 if use_bf16 else 4

    # Both layouts of labels / norms so the kernel never transposes anything.
    t_lane = t_p.reshape(1, n_pad)
    t_sub = t_p.reshape(n_pad, 1)
    sq_lane = sq.reshape(1, n_pad)
    sq_sub = sq_col.reshape(n_pad, 1)

    tm, tn, vmem_est = _choose_tiles(n_pad, d_pad, in_bytes)
    n_row_tiles = n_pad // tm
    n_col_tiles = n_pad // tn
    grid = (n_row_tiles, n_col_tiles)

    # Row-side operands only change with i: one buffer suffices when the column
    # axis is tiled (reclaims a full double-buffer of VMEM for bigger tiles).
    row_pipe = dict(pipeline_mode=pl.Buffered(1)) if n_col_tiles > 1 else {}

    xc_streams = n_row_tiles if n_col_tiles > 1 else 1
    cost = pl.CostEstimate(
        flops=2 * n_pad * n_pad * d_pad,
        transcendentals=0,
        bytes_accessed=int((1 + xc_streams) * n_pad * d_pad * in_bytes
                           + 4 * n_pad * 4 + 8 * n_pad * 4),
    )
    vmem_limit = int(min(64 * 1024 * 1024,
                         max(1.5 * vmem_est + (2 << 20), 16 * 1024 * 1024)))

    stats = pl.pallas_call(
        functools.partial(_triplet_stats_kernel, with_prec=compute_prec),
        grid=grid,
        in_specs=[
            pl.BlockSpec((tm, d_pad), lambda i, k: (i, 0), **row_pipe),   # x, row tile
            pl.BlockSpec((tn, d_pad), lambda i, k: (k, 0)),               # x, column tile
            pl.BlockSpec((1, tm), lambda i, k: (0, i), **row_pipe),       # labels, row (lanes)
            pl.BlockSpec((tn, 1), lambda i, k: (k, 0)),                   # labels, col (sublanes)
            pl.BlockSpec((1, tm), lambda i, k: (0, i), **row_pipe),       # |x|^2, row
            pl.BlockSpec((tn, 1), lambda i, k: (k, 0)),                   # |x|^2, col (+inf pad)
        ],
        out_specs=pl.BlockSpec((8, tm), lambda i, k: (0, i)),
        out_shape=jax.ShapeDtypeStruct((8, n_pad), jnp.float32),
        scratch_shapes=[pltpu.VMEM((8, tm), jnp.float32)],
        compiler_params=pltpu.CompilerParams(
            dimension_semantics=("parallel", "arbitrary"),
            vmem_limit_bytes=vmem_limit),
        cost_estimate=cost,
    )(x_op, x_op, t_lane, t_sub, sq_lane, sq_sub)

    dp2 = stats[0, :n]       # hardest-positive squared distance per sample
    dn2 = stats[1, :n]       # closest-negative squared distance per sample

    dist_p = jnp.sqrt(dp2)
    dist_n = jnp.sqrt(dn2)

    soft = isinstance(margin, str) and margin == "soft"
    if soft:
        diff = jax.nn.softplus(dist_p - dist_n)
    else:
        diff = jnp.maximum(dist_p - dist_n + margin, 0.0)
    loss = jnp.mean(diff)
    # TODO(synk): sample=True branch (torch.multinomial pos/neg sampling) and a
    # custom_vjp (pallas_call has no autodiff rule) are not implemented.

    # ---- metrics (torch.no_grad block), plain-JAX glue on O(n) vectors ----
    metrics = {}
    if compute_prec:
        dpmin2 = stats[2, :n]    # closest-positive squared distance per sample
        # Nearest non-self neighbour is same-class iff the closest positive is
        # closer than the closest negative (exact-tie ordering aside).
        metrics["prec"] = jnp.mean((dpmin2 < dn2).astype(jnp.float32))
    metrics["dist_acc"] = jnp.mean((dist_n > dist_p).astype(jnp.float32))
    if not isinstance(margin, str):
        metrics["dist_sm"] = jnp.mean((dist_n > dist_p + margin).astype(jnp.float32))
        metrics["nonzero_count"] = jnp.sum(diff != 0.0)
    metrics["dist_p"] = jnp.mean(dist_p)
    metrics["dist_n"] = jnp.mean(dist_n)
    metrics["rel_dist"] = jnp.mean((dist_n - dist_p) / jnp.maximum(dist_p, dist_n))
    return loss, metrics


def _reference_loss(inputs, targets, margin):
    """Pure-JAX reference mirroring the PyTorch module (sample=False)."""
    n = inputs.shape[0]
    x = inputs.astype(jnp.float32)
    t = targets.reshape(n)
    diffs = x[:, None, :] - x[None, :, :]
    dist = jnp.sqrt(jnp.sum(diffs * diffs, axis=-1))
    same = t[:, None] == t[None, :]
    mask_pos = same & ~jnp.eye(n, dtype=bool)
    mask_neg = ~same
    dist_p = jnp.max(jnp.where(mask_pos, dist, 0.0), axis=1)
    dist_n = jnp.min(jnp.where(mask_neg, dist, jnp.inf), axis=1)
    loss = jnp.mean(jnp.maximum(dist_p - dist_n + margin, 0.0))
    return loss, dist_p, dist_n


if __name__ == "__main__":
    key = jax.random.PRNGKey(0)
    n, d = 8, 32
    inputs = jax.random.normal(key, (n, d), dtype=jnp.float32)
    # Deterministic labels: every sample has at least one positive and one negative.
    targets = jnp.array([0, 0, 1, 1, 2, 2, 0, 1], dtype=jnp.int32).reshape(n, 1)

    ref_loss, ref_p, ref_n = _reference_loss(inputs, targets, 1.0)

    # Exact-logic check with f32 operands.
    loss32, m32 = triplet_loss(inputs, targets, margin=1.0, use_bf16=False)
    assert jnp.allclose(loss32, ref_loss, rtol=2e-3, atol=2e-3)
    assert jnp.allclose(m32["dist_p"], jnp.mean(ref_p), rtol=2e-3, atol=2e-3)
    assert jnp.allclose(m32["dist_n"], jnp.mean(ref_n), rtol=2e-3, atol=2e-3)

    # Default fast path: bf16 MXU operands, f32 accumulation.
    loss, metrics = triplet_loss(inputs, targets, margin=1.0)
    jax.block_until_ready(loss)
    for v in metrics.values():
        jax.block_until_ready(v)
    assert jnp.allclose(loss, ref_loss, rtol=1e-1, atol=1e-1)

    print("KERNEL_OK")
</pallas_src>

<mosaic_0001>
module attributes {stable_mosaic.version = 11 : i64} {
  func.func @_triplet_stats_kernel(%arg0: i32, %arg1: i32, %arg2: memref<128x128xf32, #tpu.memory_space<vmem>>, %arg3: memref<128x128xf32, #tpu.memory_space<vmem>>, %arg4: memref<1x128xi32, #tpu.memory_space<vmem>>, %arg5: memref<128x1xi32, #tpu.memory_space<vmem>>, %arg6: memref<1x128xf32, #tpu.memory_space<vmem>>, %arg7: memref<128x1xf32, #tpu.memory_space<vmem>>, %arg8: memref<8x128xf32, #tpu.memory_space<vmem>>, %arg9: memref<8x128xf32, #tpu.memory_space<vmem>>) attributes {dimension_semantics = [#tpu.dimension_semantics<parallel>, #tpu.dimension_semantics<arbitrary>], iteration_bounds = array<i64: 1, 1>, scalar_prefetch = 0 : i64, scratch_operands = 1 : i64, tpu.core_type = #tpu.core_type<tc>, window_params = [{transform_indices = @transform_0, window_bounds = array<i64: 128, 128>}, {transform_indices = @transform_1, window_bounds = array<i64: 128, 128>}, {transform_indices = @transform_2, window_bounds = array<i64: 1, 128>}, {transform_indices = @transform_3, window_bounds = array<i64: 128, 1>}, {transform_indices = @transform_4, window_bounds = array<i64: 1, 128>}, {transform_indices = @transform_5, window_bounds = array<i64: 128, 1>}, {transform_indices = @transform_6, window_bounds = array<i64: 8, 128>}]} {
    %c0_i32 = arith.constant 0 : i32
    %0 = arith.cmpi eq, %arg1, %c0_i32 : i32
    %1 = arith.extui %0 : i1 to i32
    %c0_i32_0 = arith.constant 0 : i32
    %2 = arith.cmpi ne, %1, %c0_i32_0 : i32
    scf.if %2 {
      %53 = tpu.iota {dimensions = array<i32: 0>} : vector<8x128xi32>
      %c1_i32_35 = arith.constant 1 : i32
      %54 = vector.broadcast %c1_i32_35 : i32 to vector<8x128xi32>
      %55 = arith.cmpi eq, %53, %54 : vector<8x128xi32>
      %c2_i32 = arith.constant 2 : i32
      %56 = vector.broadcast %c2_i32 : i32 to vector<8x128xi32>
      %57 = arith.cmpi eq, %53, %56 : vector<8x128xi32>
      %58 = arith.ori %55, %57 : vector<8x128xi1>
      %cst_36 = arith.constant 0x7F800000 : f32
      %cst_37 = arith.constant 0.000000e+00 : f32
      %59 = vector.broadcast %cst_36 : f32 to vector<8x128xf32>
      %60 = vector.broadcast %cst_37 : f32 to vector<8x128xf32>
      %61 = arith.select %58, %59, %60 : vector<8x128xi1>, vector<8x128xf32>
      %c0_38 = arith.constant 0 : index
      %c0_39 = arith.constant 0 : index
      %62 = vector.load %arg9[%c0_38, %c0_39] : memref<8x128xf32, #tpu.memory_space<vmem>>, vector<8x128xf32>
      tpu.vector_store %arg9[%c0_38, %c0_39], %61 {strides = array<i32>} : memref<8x128xf32, #tpu.memory_space<vmem>>, vector<8x128xf32>,
    } else {
    }
    %c0 = arith.constant 0 : index
    %c0_1 = arith.constant 0 : index
    %3 = vector.load %arg3[%c0, %c0_1] : memref<128x128xf32, #tpu.memory_space<vmem>>, vector<128x128xf32>
    %c0_2 = arith.constant 0 : index
    %c0_3 = arith.constant 0 : index
    %4 = vector.load %arg2[%c0_2, %c0_3] : memref<128x128xf32, #tpu.memory_space<vmem>>, vector<128x128xf32>
    %cst = arith.constant dense<0.000000e+00> : vector<128x128xf32>
    %5 = tpu.matmul %3, %4, %cst {dimension_numbers = #tpu.dot_dimension_numbers<[1], [1], [0], [0], [0, 0, 1, 0], [], []>} : vector<128x128xf32>, vector<128x128xf32>, vector<128x128xf32> -> vector<128x128xf32>
    %c0_4 = arith.constant 0 : index
    %c0_5 = arith.constant 0 : index
    %6 = vector.load %arg7[%c0_4, %c0_5] : memref<128x1xf32, #tpu.memory_space<vmem>>, vector<128x1xf32>
    %c0_6 = arith.constant 0 : index
    %c0_7 = arith.constant 0 : index
    %7 = vector.load %arg6[%c0_6, %c0_7] : memref<1x128xf32, #tpu.memory_space<vmem>>, vector<1x128xf32>
    %8 = vector.broadcast %6 : vector<128x1xf32> to vector<128x128xf32>
    %9 = vector.broadcast %7 : vector<1x128xf32> to vector<128x128xf32>
    %10 = arith.addf %8, %9 : vector<128x128xf32>
    %cst_8 = arith.constant 2.000000e+00 : f32
    %11 = vector.broadcast %cst_8 : f32 to vector<128x128xf32>
    %12 = arith.mulf %11, %5 : vector<128x128xf32>
    %13 = arith.subf %10, %12 : vector<128x128xf32>
    %cst_9 = arith.constant 0.000000e+00 : f32
    %14 = vector.broadcast %cst_9 : f32 to vector<128x128xf32>
    %15 = arith.maximumf %13, %14 : vector<128x128xf32>
    %c0_10 = arith.constant 0 : index
    %c0_11 = arith.constant 0 : index
    %16 = vector.load %arg5[%c0_10, %c0_11] : memref<128x1xi32, #tpu.memory_space<vmem>>, vector<128x1xi32>
    %c0_12 = arith.constant 0 : index
    %c0_13 = arith.constant 0 : index
    %17 = vector.load %arg4[%c0_12, %c0_13] : memref<1x128xi32, #tpu.memory_space<vmem>>, vector<1x128xi32>
    %18 = vector.broadcast %16 : vector<128x1xi32> to vector<128x128xi32>
    %19 = vector.broadcast %17 : vector<1x128xi32> to vector<128x128xi32>
    %20 = arith.cmpi eq, %18, %19 : vector<128x128xi32>
    %c128_i32 = arith.constant 128 : i32
    %21 = arith.muli %arg1, %c128_i32 : i32
    %c1_i32 = arith.constant 1 : i32
    %22 = arith.addi %arg0, %c1_i32 : i32
    %c128_i32_14 = arith.constant 128 : i32
    %23 = arith.muli %22, %c128_i32_14 : i32
    %24 = arith.cmpi slt, %21, %23 : i32
    %c128_i32_15 = arith.constant 128 : i32
    %25 = arith.muli %arg0, %c128_i32_15 : i32
    %c1_i32_16 = arith.constant 1 : i32
    %26 = arith.addi %arg1, %c1_i32_16 : i32
    %c128_i32_17 = arith.constant 128 : i32
    %27 = arith.muli %26, %c128_i32_17 : i32
    %28 = arith.cmpi slt, %25, %27 : i32
    %29 = arith.andi %24, %28 : i1
    %30 = arith.extui %29 : i1 to i32
    %c0_i32_18 = arith.constant 0 : i32
    %31 = arith.cmpi ne, %30, %c0_i32_18 : i32
    %32:2 = scf.if %31 -> (vector<128x128xf32>, vector<128x128xf32>) {
      %c128_i32_35 = arith.constant 128 : i32
      %53 = arith.muli %arg1, %c128_i32_35 : i32
      %54 = tpu.iota {dimensions = array<i32: 0>} : vector<128x128xi32>
      %55 = vector.broadcast %53 : i32 to vector<128x128xi32>
      %56 = arith.addi %55, %54 : vector<128x128xi32>
      %c128_i32_36 = arith.constant 128 : i32
      %57 = arith.muli %arg0, %c128_i32_36 : i32
      %58 = tpu.iota {dimensions = array<i32: 1>} : vector<128x128xi32>
      %59 = vector.broadcast %57 : i32 to vector<128x128xi32>
      %60 = arith.addi %59, %58 : vector<128x128xi32>
      %61 = arith.cmpi ne, %56, %60 : vector<128x128xi32>
      %62 = arith.andi %20, %61 : vector<128x128xi1>
      %cst_37 = arith.constant 0.000000e+00 : f32
      %63 = vector.broadcast %cst_37 : f32 to vector<128x128xf32>
      %64 = arith.select %62, %15, %63 : vector<128x128xi1>, vector<128x128xf32>
      %cst_38 = arith.constant 0x7F800000 : f32
      %65 = vector.broadcast %cst_38 : f32 to vector<128x128xf32>
      %66 = arith.select %62, %15, %65 : vector<128x128xi1>, vector<128x128xf32>
      scf.yield %64, %66 : vector<128x128xf32>, vector<128x128xf32>
    } else {
      %cst_35 = arith.constant 0.000000e+00 : f32
      %53 = vector.broadcast %cst_35 : f32 to vector<128x128xf32>
      %54 = arith.select %20, %15, %53 : vector<128x128xi1>, vector<128x128xf32>
      %cst_36 = arith.constant 0x7F800000 : f32
      %55 = vector.broadcast %cst_36 : f32 to vector<128x128xf32>
      %56 = arith.select %20, %15, %55 : vector<128x128xi1>, vector<128x128xf32>
      scf.yield %54, %56 : vector<128x128xf32>, vector<128x128xf32>
    }
    %c0_19 = arith.constant 0 : index
    %c0_20 = arith.constant 0 : index
    %33 = vector.load %arg9[%c0_19, %c0_20] : memref<8x128xf32, #tpu.memory_space<vmem>>, vector<1x128xf32>
    %cst_21 = arith.constant dense<0xFF800000> : vector<128xf32>
    %34 = vector.multi_reduction <maximumf>, %32#0, %cst_21 [0] : vector<128x128xf32> to vector<128xf32>
    %35 = vector.shape_cast %34 : vector<128xf32> to vector<1x128xf32>
    %36 = arith.maximumf %33, %35 : vector<1x128xf32>
    %c0_22 = arith.constant 0 : index
    %c0_23 = arith.constant 0 : index
    %37 = vector.load %arg9[%c0_22, %c0_23] : memref<8x128xf32, #tpu.memory_space<vmem>>, vector<1x128xf32>
    tpu.vector_store %arg9[%c0_22, %c0_23], %36 {strides = array<i32>} : memref<8x128xf32, #tpu.memory_space<vmem>>, vector<1x128xf32>,
    %c1 = arith.constant 1 : index
    %c0_24 = arith.constant 0 : index
    %38 = vector.load %arg9[%c1, %c0_24] : memref<8x128xf32, #tpu.memory_space<vmem>>, vector<1x128xf32>
    %cst_25 = arith.constant 0x7F800000 : f32
    %39 = vector.broadcast %cst_25 : f32 to vector<128x128xf32>
    %40 = arith.select %20, %39, %15 : vector<128x128xi1>, vector<128x128xf32>
    %cst_26 = arith.constant dense<0x7F800000> : vector<128xf32>
    %41 = vector.multi_reduction <minimumf>, %40, %cst_26 [0] : vector<128x128xf32> to vector<128xf32>
    %42 = vector.shape_cast %41 : vector<128xf32> to vector<1x128xf32>
    %43 = arith.minimumf %38, %42 : vector<1x128xf32>
    %c1_27 = arith.constant 1 : index
    %c0_28 = arith.constant 0 : index
    %44 = vector.load %arg9[%c1_27, %c0_28] : memref<8x128xf32, #tpu.memory_space<vmem>>, vector<1x128xf32>
    tpu.vector_store %arg9[%c1_27, %c0_28], %43 {strides = array<i32>} : memref<8x128xf32, #tpu.memory_space<vmem>>, vector<1x128xf32>,
    %c2 = arith.constant 2 : index
    %c0_29 = arith.constant 0 : index
    %45 = vector.load %arg9[%c2, %c0_29] : memref<8x128xf32, #tpu.memory_space<vmem>>, vector<1x128xf32>
    %cst_30 = arith.constant dense<0x7F800000> : vector<128xf32>
    %46 = vector.multi_reduction <minimumf>, %32#1, %cst_30 [0] : vector<128x128xf32> to vector<128xf32>
    %47 = vector.shape_cast %46 : vector<128xf32> to vector<1x128xf32>
    %48 = arith.minimumf %45, %47 : vector<1x128xf32>
    %c2_31 = arith.constant 2 : index
    %c0_32 = arith.constant 0 : index
    %49 = vector.load %arg9[%c2_31, %c0_32] : memref<8x128xf32, #tpu.memory_space<vmem>>, vector<1x128xf32>
    tpu.vector_store %arg9[%c2_31, %c0_32], %48 {strides = array<i32>} : memref<8x128xf32, #tpu.memory_space<vmem>>, vector<1x128xf32>,
    %c0_i32_33 = arith.constant 0 : i32
    %50 = arith.cmpi eq, %arg1, %c0_i32_33 : i32
    %51 = arith.extui %50 : i1 to i32
    %c0_i32_34 = arith.constant 0 : i32
    %52 = arith.cmpi ne, %51, %c0_i32_34 : i32
    scf.if %52 {
      %c0_35 = arith.constant 0 : index
      %c0_36 = arith.constant 0 : index
      %53 = vector.load %arg9[%c0_35, %c0_36] : memref<8x128xf32, #tpu.memory_space<vmem>>, vector<8x128xf32>
      %c0_37 = arith.constant 0 : index
      %c0_38 = arith.constant 0 : index
      %54 = vector.load %arg8[%c0_37, %c0_38] : memref<8x128xf32, #tpu.memory_space<vmem>>, vector<8x128xf32>
      tpu.vector_store %arg8[%c0_37, %c0_38], %53 {strides = array<i32>} : memref<8x128xf32, #tpu.memory_space<vmem>>, vector<8x128xf32>,
    } else {
    }
    return
  }
  func.func @transform_0(%arg0: i32, %arg1: i32) -> (i32, i32) {
    %c0_i32 = arith.constant 0 : i32
    %c0_i32_0 = arith.constant 0 : i32
    return %arg0, %c0_i32 : i32, i32
  }
  func.func @transform_1(%arg0: i32, %arg1: i32) -> (i32, i32) {
    %c0_i32 = arith.constant 0 : i32
    %c0_i32_0 = arith.constant 0 : i32
    return %arg1, %c0_i32 : i32, i32
  }
  func.func @transform_2(%arg0: i32, %arg1: i32) -> (i32, i32) {
    %c0_i32 = arith.constant 0 : i32
    %c0_i32_0 = arith.constant 0 : i32
    return %c0_i32, %arg0 : i32, i32
  }
  func.func @transform_3(%arg0: i32, %arg1: i32) -> (i32, i32) {
    %c0_i32 = arith.constant 0 : i32
    %c0_i32_0 = arith.constant 0 : i32
    return %arg1, %c0_i32 : i32, i32
  }
  func.func @transform_4(%arg0: i32, %arg1: i32) -> (i32, i32) {
    %c0_i32 = arith.constant 0 : i32
    %c0_i32_0 = arith.constant 0 : i32
    return %c0_i32, %arg0 : i32, i32
  }
  func.func @transform_5(%arg0: i32, %arg1: i32) -> (i32, i32) {
    %c0_i32 = arith.constant 0 : i32
    %c0_i32_0 = arith.constant 0 : i32
    return %arg1, %c0_i32 : i32, i32
  }
  func.func @transform_6(%arg0: i32, %arg1: i32) -> (i32, i32) {
    %c0_i32 = arith.constant 0 : i32
    %c0_i32_0 = arith.constant 0 : i32
    return %c0_i32, %arg0 : i32, i32
  }
}

</mosaic_0001>

<bundles_post_ra>
// kernel: tpu_custom_call.1
= control target key start
LH: loop header
LB: loop body
LE: loop exit
PB: predicated region body
PF: predicated region fallthrough
CT: control target
= control target key end

     0   :  { %v782_v1 = vmov 0   ;;  %s1473_s0 = inlined_call_operand.vmem [shape: f32[128,128], index: 0, kind: input, shape index: {}]   ;;  %s1474_s1 = inlined_call_operand.vmem [shape: f32[128,128], index: 1, kind: input, shape index: {}]   ;;  %s1475_s2 = inlined_call_operand.vmem [shape: s32[1,128], index: 2, kind: input, shape index: {}]   ;;  %s1476_s3 = inlined_call_operand.vmem [shape: s32[128,1], index: 3, kind: input, shape index: {}]   ;;  %s1477_s4 = inlined_call_operand.vmem [shape: f32[1,128], index: 4, kind: input, shape index: {}]   ;;  %s1478_s5 = inlined_call_operand.vmem [shape: f32[128,1], index: 5, kind: input, shape index: {}]   ;;  %s1479_s6 = inlined_call_operand.hbm [shape: f32[8,128], index: 6, kind: output, shape index: {}]  }
   0x1   :  { %v66_v0 = vld [vmem:[%s1473_s0 + $0x78] sm:$0xff]  ;;  %753 = vset.pattern.permute.xlu2 %v782_v1  ;;  %752 = vset.pattern.permute.xlu1 %v782_v1  ;;  %v136_v2 = vld [vmem:[%s1478_s5 + $0x20] sm:$0xff]  ;;  %v134_v3 = vld [vmem:[%s1478_s5 + $0x10] sm:$0xff] }
   0x2   :  { %751 = vset.pattern.permute.xlu0 %v782_v1  ;;  %67 = vmatpush.xpose.msra.mxu0 %v66_v0  ;;  %v132_v4 = vld [vmem:[%s1478_s5] sm:$0xff]  ;;  %v65_v5 = vld [vmem:[%s1473_s0 + $0x70] sm:$0xff]  ;;  %v64_v6 = vld [vmem:[%s1473_s0 + $0x68] sm:$0xff] }
   0x3   :  { %700 = vmatpush.xpose.msra.mxu1 %v66_v0  ;;  %701 = vmatpush.xpose.msra.mxu2 %v66_v0  ;;  %v137_v7 = vld [vmem:[%s1478_s5 + $0x28] sm:$0xff] }
   0x4   :  { %702 = vmatpush.xpose.msra.mxu3 %v66_v0  ;;  %171 = vperm.xlu2 %753, %v136_v2  }
   0x5   :  { %161 = vperm.xlu1 %752, %v134_v3   ;;  %151 = vperm.xlu0 %751, %v132_v4  }
   0x6   :  { %68 = vmatpush.xpose.msra.mxu0 %v65_v5 }
   0x7   :  { %703 = vmatpush.xpose.msra.mxu1 %v65_v5  ;;  %704 = vmatpush.xpose.msra.mxu2 %v65_v5 }
   0x8   :  { %705 = vmatpush.xpose.msra.mxu3 %v65_v5 }
   0x9   :  { %11 = vsyncpa [#allocation4], 0  ;;  %v135_v8 = vld [vmem:[%s1478_s5 + $0x18] sm:$0xff]  ;;  %v133_v9 = vld [vmem:[%s1478_s5 + $0x8] sm:$0xff]  ;;  %s691_s28 = sshll.u32 %s1479_s6, 4  ;;  %s692_s28 = int_to_ptr.hbm [resolvable:$true] %s691_s28 }
   0xa   :  { %69 = vmatpush.xpose.msra.mxu0 %v64_v6  ;;  %v63_v10 = vld [vmem:[%s1473_s0 + $0x60] sm:$0xff]  ;;  %v62_v11 = vld [vmem:[%s1473_s0 + $0x58] sm:$0xff]  ;;  %v138_v14 = vld [vmem:[%s1478_s5 + $0x30] sm:$0xff] }
   0xb   :  { %706 = vmatpush.xpose.msra.mxu1 %v64_v6  ;;  %707 = vmatpush.xpose.msra.mxu2 %v64_v6  ;;  %v140_v12 = vld [vmem:[%s1478_s5 + $0x40] sm:$0xff]  ;;  %v139_v13 = vld [vmem:[%s1478_s5 + $0x38] sm:$0xff]  ;;  %v61_v15 = vld [vmem:[%s1473_s0 + $0x50] sm:$0xff] }
   0xc   :  { %708 = vmatpush.xpose.msra.mxu3 %v64_v6  ;;  %176 = vperm.xlu2 %753, %v137_v7   ;;  %v60_v16 = vld [vmem:[%s1473_s0 + $0x48] sm:$0xff]  ;;  %v143_v17 = vld [vmem:[%s1478_s5 + $0x58] sm:$0xff]  ;;  %v142_v18 = vld [vmem:[%s1478_s5 + $0x50] sm:$0xff] }
   0xd   :  { %166 = vperm.xlu1 %752, %v135_v8   ;;  %156 = vperm.xlu0 %751, %v133_v9   ;;  %v141_v19 = vld [vmem:[%s1478_s5 + $0x48] sm:$0xff]  ;;  %v59_v20 = vld [vmem:[%s1473_s0 + $0x40] sm:$0xff]  ;;  %v58_v21 = vld [vmem:[%s1473_s0 + $0x38] sm:$0xff] }
   0xe   :  { %70 = vmatpush.xpose.msra.mxu0 %v63_v10  ;;  %v146_v22 = vld [vmem:[%s1478_s5 + $0x70] sm:$0xff]  ;;  %v145_v23 = vld [vmem:[%s1478_s5 + $0x68] sm:$0xff]  ;;  %v144_v24 = vld [vmem:[%s1478_s5 + $0x60] sm:$0xff] }
   0xf   :  { %709 = vmatpush.xpose.msra.mxu1 %v63_v10  ;;  %710 = vmatpush.xpose.msra.mxu2 %v63_v10  ;;  %v57_v25 = vld [vmem:[%s1473_s0 + $0x30] sm:$0xff]  ;;  %v56_v26 = vld [vmem:[%s1473_s0 + $0x28] sm:$0xff]  ;;  %v296_v28 = vld [vmem:[%s1476_s3] sm:$0xff] }
  0x10   :  { %711 = vmatpush.xpose.msra.mxu3 %v63_v10  ;;  %v297_v27 = vld [vmem:[%s1476_s3 + $0x8] sm:$0xff]  ;;  %v147_v29 = vld [vmem:[%s1478_s5 + $0x78] sm:$0xff]  ;;  %v55_v30 = vld [vmem:[%s1473_s0 + $0x20] sm:$0xff] }
  0x11   :  { %v54_v31 = vld [vmem:[%s1473_s0 + $0x18] sm:$0xff]  ;;  %v300_v32 = vld [vmem:[%s1476_s3 + $0x20] sm:$0xff]  ;;  %v298_v34 = vld [vmem:[%s1476_s3 + $0x10] sm:$0xff] }
  0x12   :  { %71 = vmatpush.xpose.msra.mxu0 %v62_v11  ;;  %v299_v33 = vld [vmem:[%s1476_s3 + $0x18] sm:$0xff]  ;;  %v53_v35 = vld [vmem:[%s1473_s0 + $0x10] sm:$0xff]  ;;  %v52_v36 = vld [vmem:[%s1473_s0 + $0x8] sm:$0xff] }
  0x13   :  { %712 = vmatpush.xpose.msra.mxu1 %v62_v11  ;;  %713 = vmatpush.xpose.msra.mxu2 %v62_v11  ;;  %v303_v37 = vld [vmem:[%s1476_s3 + $0x38] sm:$0xff]  ;;  %v302_v38 = vld [vmem:[%s1476_s3 + $0x30] sm:$0xff]  ;;  %v301_v39 = vld [vmem:[%s1476_s3 + $0x28] sm:$0xff] }
  0x14   :  { %714 = vmatpush.xpose.msra.mxu3 %v62_v11  ;;  %191 = vperm.xlu2 %753, %v140_v12   ;;  %v51_v40 = vld [vmem:[%s1473_s0] sm:$0xff]  ;;  %v306_v45 = vld [vmem:[%s1476_s3 + $0x50] sm:$0xff]  ;;  %v305_v46 = vld [vmem:[%s1476_s3 + $0x48] sm:$0xff] }
  0x15   :  { %186 = vperm.xlu1 %752, %v139_v13   ;;  %181 = vperm.xlu0 %751, %v138_v14   ;;  %v35_v41 = vld [vmem:[%s1474_s1] sm:$0xff]  ;;  %v36_v48 = vld [vmem:[%s1474_s1 + $0x8] sm:$0xff]  ;;  %v307_v54 = vld [vmem:[%s1476_s3 + $0x58] sm:$0xff] }
  0x16   :  { %72 = vmatpush.xpose.msra.mxu0 %v61_v15  ;;  %v39_v42 = vld [vmem:[%s1474_s1 + $0x20] sm:$0xff]  ;;  %v40_v49 = vld [vmem:[%s1474_s1 + $0x28] sm:$0xff]  ;;  %v37_v55 = vld [vmem:[%s1474_s1 + $0x10] sm:$0xff] }
  0x17   :  { %715 = vmatpush.xpose.msra.mxu1 %v61_v15  ;;  %716 = vmatpush.xpose.msra.mxu2 %v61_v15  ;;  %v43_v43 = vld [vmem:[%s1474_s1 + $0x40] sm:$0xff]  ;;  %v44_v50 = vld [vmem:[%s1474_s1 + $0x48] sm:$0xff]  ;;  %v41_v56 = vld [vmem:[%s1474_s1 + $0x30] sm:$0xff] }
  0x18   :  { %717 = vmatpush.xpose.msra.mxu3 %v61_v15  ;;  %v47_v44 = vld [vmem:[%s1474_s1 + $0x60] sm:$0xff]  ;;  %v48_v51 = vld [vmem:[%s1474_s1 + $0x68] sm:$0xff]  ;;  %v45_v57 = vld [vmem:[%s1474_s1 + $0x50] sm:$0xff] }
  0x19   :  { %v304_v47 = vld [vmem:[%s1476_s3 + $0x40] sm:$0xff]  ;;  %v309_v52 = vld [vmem:[%s1476_s3 + $0x68] sm:$0xff]  ;;  %v49_v58 = vld [vmem:[%s1474_s1 + $0x70] sm:$0xff] }
  0x1a   :  { %73 = vmatpush.xpose.msra.mxu0 %v60_v16  ;;  %v308_v53 = vld [vmem:[%s1476_s3 + $0x60] sm:$0xff]  ;;  %v311_v59 = vld [vmem:[%s1476_s3 + $0x78] sm:$0xff]  ;;  %v310_v60 = vld [vmem:[%s1476_s3 + $0x70] sm:$0xff] }
  0x1b   :  { %718 = vmatpush.xpose.msra.mxu1 %v60_v16  ;;  %719 = vmatpush.xpose.msra.mxu2 %v60_v16  ;;  %v38_v61 = vld [vmem:[%s1474_s1 + $0x18] sm:$0xff] }
  0x1c   :  { %720 = vmatpush.xpose.msra.mxu3 %v60_v16  ;;  %206 = vperm.xlu2 %753, %v143_v17   ;;  %v42_v62 = vld [vmem:[%s1474_s1 + $0x38] sm:$0xff] }
  0x1d   :  { %201 = vperm.xlu1 %752, %v142_v18   ;;  %196 = vperm.xlu0 %751, %v141_v19   ;;  %v46_v63 = vld [vmem:[%s1474_s1 + $0x58] sm:$0xff] }
  0x1e   :  { %74 = vmatpush.xpose.msra.mxu0 %v59_v20  ;;  %v50_v0 = vld [vmem:[%s1474_s1 + $0x78] sm:$0xff] }
  0x1f   :  { %721 = vmatpush.xpose.msra.mxu1 %v59_v20  ;;  %722 = vmatpush.xpose.msra.mxu2 %v59_v20 }
  0x20   :  { %723 = vmatpush.xpose.msra.mxu3 %v59_v20 }
  0x22   :  { %75 = vmatpush.xpose.msra.mxu0 %v58_v21 }
  0x23   :  { %724 = vmatpush.xpose.msra.mxu1 %v58_v21  ;;  %725 = vmatpush.xpose.msra.mxu2 %v58_v21 }
  0x24   :  { %726 = vmatpush.xpose.msra.mxu3 %v58_v21  ;;  %221 = vperm.xlu2 %753, %v146_v22   ;;  %v28_v22 = vlaneseq }
  0x25   :  { %216 = vperm.xlu1 %752, %v145_v23   ;;  %211 = vperm.xlu0 %751, %v144_v24  }
  0x26   :  { %76 = vmatpush.xpose.msra.mxu0 %v57_v25  ;;  %v1026_v24 = vshrl.u32 %v28_v22, 7 }
  0x27   :  { %727 = vmatpush.xpose.msra.mxu1 %v57_v25  ;;  %728 = vmatpush.xpose.msra.mxu2 %v57_v25 }
  0x28   :  { %729 = vmatpush.xpose.msra.mxu3 %v57_v25 }
  0x2a   :  { %77 = vmatpush.xpose.msra.mxu0 %v56_v26 }
  0x2b   :  { %730 = vmatpush.xpose.msra.mxu1 %v56_v26  ;;  %731 = vmatpush.xpose.msra.mxu2 %v56_v26 }
  0x2c   :  { %732 = vmatpush.xpose.msra.mxu3 %v56_v26  ;;  %317 = vperm.xlu2 %753, %v297_v27   ;;  %v1030_v26 = vand.u32 127, %v28_v22  ;;  %v395_v27 = vadd.s32 32, %v1026_v24 }
  0x2d   :  { %314 = vperm.xlu1 %752, %v296_v28   ;;  %226 = vperm.xlu0 %751, %v147_v29   ;;  %v1038_v29 = vld [vmem:[%s1477_s4] ss:$0 sm:$0xff] }
  0x2e   :  { %78 = vmatpush.xpose.msra.mxu0 %v55_v30  ;;  %vm432_vm0 = vcmp.ne.s32.totalorder %v395_v27, %v1030_v26  ;;  %vm428_vm1 = vcmp.ne.s32.totalorder %v1026_v24, %v1030_v26 }
  0x2f   :  { %733 = vmatpush.xpose.msra.mxu1 %v55_v30  ;;  %734 = vmatpush.xpose.msra.mxu2 %v55_v30 }
  0x30   :  { %735 = vmatpush.xpose.msra.mxu3 %v55_v30 }
  0x32   :  { %79 = vmatpush.xpose.msra.mxu0 %v54_v31 }
  0x33   :  { %736 = vmatpush.xpose.msra.mxu1 %v54_v31  ;;  %737 = vmatpush.xpose.msra.mxu2 %v54_v31 }
  0x34   :  { %738 = vmatpush.xpose.msra.mxu3 %v54_v31  ;;  %326 = vperm.xlu2 %753, %v300_v32  }
  0x35   :  { %323 = vperm.xlu1 %752, %v299_v33   ;;  %320 = vperm.xlu0 %751, %v298_v34   ;;  %v1048_v33 = vadd.s32 8, %v1026_v24 }
  0x36   :  { %80 = vmatpush.xpose.msra.mxu0 %v53_v35 }
  0x37   :  { %739 = vmatpush.xpose.msra.mxu1 %v53_v35  ;;  %740 = vmatpush.xpose.msra.mxu2 %v53_v35  ;;  %vm429_vm4 = vcmp.ne.s32.totalorder %v1048_v33, %v1030_v26 }
  0x38   :  { %741 = vmatpush.xpose.msra.mxu3 %v53_v35 }
  0x3a   :  { %81 = vmatpush.xpose.msra.mxu0 %v52_v36 }
  0x3b   :  { %742 = vmatpush.xpose.msra.mxu1 %v52_v36  ;;  %743 = vmatpush.xpose.msra.mxu2 %v52_v36 }
  0x3c   :  { %744 = vmatpush.xpose.msra.mxu3 %v52_v36  ;;  %335 = vperm.xlu2 %753, %v303_v37   ;;  %v1061_v37 = vld [vmem:[%s1475_s2] ss:$0 sm:$0xff]  ;;  %s784_s2 = smov [#allocation3]  }
  0x3d   :  { %332 = vperm.xlu1 %752, %v302_v38   ;;  %329 = vperm.xlu0 %751, %v301_v39   ;;  %v1064_v38 = vadd.s32 56, %v1026_v24  ;;  %s689_s25 = sshll.u32 %s784_s2, 4  ;;  %s690_s25 = int_to_ptr.vmem [resolvable:$true] %s689_s25 }
  0x3e   :  { %82 = vmatpush.xpose.msra.mxu0 %v51_v40 }
  0x3f   :  { %745 = vmatpush.xpose.msra.mxu1 %v51_v40  ;;  %746 = vmatpush.xpose.msra.mxu2 %v51_v40 }
  0x40   :  { %747 = vmatpush.xpose.msra.mxu3 %v51_v40 }
  0x41   :  { %83 = vmatmul.f32.vlgmr.msra.gmra.mxu0 %v35_v41 }
  0x42   :  { %95 = vmatmul.f32.vlgmr.msra.gmra.mxu1 %v39_v42  ;;  %107 = vmatmul.f32.vlgmr.msra.gmra.mxu2 %v43_v43 }
  0x43   :  { %119 = vmatmul.f32.vlgmr.msra.gmra.mxu3 %v47_v44  ;;  %v1077_v44 = vadd.s32 80, %v1026_v24 }
  0x44   :  { %344 = vperm.xlu2 %753, %v306_v45  }
  0x45   :  { %341 = vperm.xlu1 %752, %v305_v46   ;;  %338 = vperm.xlu0 %751, %v304_v47   ;;  %v1085_v47 = vadd.s32 104, %v1026_v24 }
  0x49   :  { %86 = vmatmul.f32.gmra.mxu0 %v36_v48  ;;  %v1088_v48 = vadd.s32 24, %v1026_v24 }
  0x4a   :  { %98 = vmatmul.f32.gmra.mxu1 %v40_v49  ;;  %110 = vmatmul.f32.gmra.mxu2 %v44_v50  ;;  %v1092_v50 = vadd.s32 16, %v1026_v24 }
  0x4b   :  { %122 = vmatmul.f32.gmra.mxu3 %v48_v51 }
  0x4c   :  { %353 = vperm.xlu2 %753, %v309_v52  }
  0x4d   :  { %350 = vperm.xlu1 %752, %v308_v53   ;;  %347 = vperm.xlu0 %751, %v307_v54  }
  0x51   :  { %89 = vmatmul.f32.gmra.mxu0 %v37_v55  ;;  %v399_v55 = vadd.s32 64, %v1026_v24 }
  0x52   :  { %101 = vmatmul.f32.gmra.mxu1 %v41_v56  ;;  %113 = vmatmul.f32.gmra.mxu2 %v45_v57  ;;  %v1108_v56 = vadd.s32 48, %v1026_v24  ;;  %v1111_v57 = vadd.s32 40, %v1026_v24 }
  0x53   :  { %125 = vmatmul.f32.gmra.mxu3 %v49_v58  ;;  %vm436_vm9 = vcmp.ne.s32.totalorder %v399_v55, %v1030_v26 }
  0x54   :  { %vm433_vm10 = vcmp.ne.s32.totalorder %v1111_v57, %v1030_v26 }
  0x55   :  { %359 = vperm.xlu1 %752, %v311_v59   ;;  %356 = vperm.xlu0 %751, %v310_v60  }
  0x59   :  { %92 = vmatmul.f32.gmra.mxu0 %v38_v61 }
  0x5a   :  { %104 = vmatmul.f32.gmra.mxu1 %v42_v62  ;;  %116 = vmatmul.f32.gmra.mxu2 %v46_v63 }
  0x5b   :  { %128 = vmatmul.f32.gmra.mxu3 %v50_v0 }
  0x5e   :  { %v172_v1 = vpop.permute.xlu2 %171 }
  0x5f   :  { %v236_v30 = vadd.f32 %v1038_v29, %v172_v1  ;;  %v1130_v1 = vadd.s32 72, %v1026_v24 }
  0x61   :  { %vm437_vm11 = vcmp.ne.s32.totalorder %v1130_v1, %v1030_v26 }
  0x66   :  { %v177_v4 = vpop.permute.xlu2 %176 }
  0x67   :  { %v1042_v31 = vadd.f32 %v1038_v29, %v177_v4 }
  0x6e   :  { %v192_v7 = vpop.permute.xlu2 %191 }
  0x6f   :  { %v1045_v32 = vadd.f32 %v1038_v29, %v192_v7  ;;  %v403_v7 = vadd.s32 96, %v1026_v24 }
  0x71   :  { %vm440_vm12 = vcmp.ne.s32.totalorder %v403_v7, %v1030_v26 }
  0x76   :  { %v207_v10 = vpop.permute.xlu2 %206 }
  0x77   :  { %v162_v2 = vpop.permute.xlu1 %161  ;;  %v152_v3 = vpop.permute.xlu0 %151  ;;  %v1052_v34 = vadd.f32 %v1038_v29, %v207_v10 }
  0x78   :  { %v1055_v35 = vadd.f32 %v1038_v29, %v162_v2  ;;  %v232_v36 = vadd.f32 %v1038_v29, %v152_v3 }
  0x7e   :  { %v222_v13 = vpop.permute.xlu2 %221 }
  0x7f   :  { %v167_v5 = vpop.permute.xlu1 %166  ;;  %v157_v6 = vpop.permute.xlu0 %156  ;;  %v1069_v41 = vadd.f32 %v1038_v29, %v222_v13 }
  0x80   :  { %v1072_v42 = vadd.f32 %v1038_v29, %v167_v5  ;;  %v1080_v46 = vadd.f32 %v1038_v29, %v157_v6 }
  0x86   :  { %v1014_v17 = vpop.permute.xlu2 %317 }
  0x87   :  { %v187_v8 = vpop.permute.xlu1 %186  ;;  %v182_v9 = vpop.permute.xlu0 %181  ;;  %vm363_vm3 = vcmp.eq.s32.totalorder %v1014_v17, %v1061_v37 }
  0x88   :  { %v1099_v53 = vadd.f32 %v1038_v29, %v187_v8  ;;  %v1102_v54 = vadd.f32 %v1038_v29, %v182_v9 }
  0x8e   :  { %v1020_v20 = vpop.permute.xlu2 %326 }
  0x8f   :  { %v202_v11 = vpop.permute.xlu1 %201  ;;  %v197_v12 = vpop.permute.xlu0 %196  ;;  %vm366_vm5 = vcmp.eq.s32.totalorder %v1020_v20, %v1061_v37 }
  0x90   :  { %v1114_v61 = vadd.f32 %v1038_v29, %v202_v11  ;;  %v1117_v62 = vadd.f32 %v1038_v29, %v197_v12  ;;  %vm448_vm7 = vmand %vm366_vm5, %vm432_vm0 }
  0x96   :  { %v1028_v25 = vpop.permute.xlu2 %335 }
  0x97   :  { %v1012_v14 = vpop.permute.xlu1 %216  ;;  %v212_v15 = vpop.permute.xlu0 %211 }
  0x98   :  { %v244_v63 = vadd.f32 %v1038_v29, %v212_v15 }
  0x9e   :  { %v1074_v43 = vpop.permute.xlu2 %344 }
  0x9f   :  { %v315_v16 = vpop.permute.xlu1 %314  ;;  %v1016_v18 = vpop.permute.xlu0 %226 }
  0xa0   :  { %vm362_vm2 = vcmp.eq.s32.totalorder %v315_v16, %v1061_v37 }
  0xa1   :  { %vm1125_vm6 = vmand %vm362_vm2, %vm428_vm1  ;;  %vm441_vm1 = vcmp.ne.s32.totalorder %v1085_v47, %v1030_v26 }
  0xa7   :  { %v1018_v19 = vpop.permute.xlu1 %323  ;;  %v1022_v21 = vpop.permute.xlu0 %320 }
  0xaf   :  { %v1024_v23 = vpop.permute.xlu1 %332  ;;  %v1033_v28 = vpop.permute.xlu0 %329 }
  0xb0   :  { %vm367_vm13 = vcmp.eq.s32.totalorder %v1033_v28, %v1061_v37 }
  0xb7   :  { %v1066_v39 = vpop.permute.xlu1 %341  ;;  %v339_v58 = vpop.permute.xlu0 %338 }
  0xb8   :  { %vm370_vm8 = vcmp.eq.s32.totalorder %v339_v58, %v1061_v37 }
  0xb9   :  { %vm1167_vm14 = vmand %vm370_vm8, %vm436_vm9 }
  0xbe   :  { %v84_v40 = vpop.f32.mrf.mxu0 }
  0xbf   :  { %v248_v45 = vmul.f32 2.0, %v84_v40  ;;  %v96_v49 = vpop.f32.mrf.mxu1  ;;  %v351_v16 = vpop.permute.xlu1 %350 }
  0xc0   :  { %v252_v52 = vmul.f32 2.0, %v96_v49  ;;  %v1154_v49 = vpop.permute.xlu2 %353  ;;  %vm374_vm15 = vcmp.eq.s32.totalorder %v351_v16, %v1061_v37  ;;  %v1221_v7 = vpop.permute.xlu0 %347 }
  0xc1   :  { %v264_v51 = vsub.f32 %v232_v36, %v248_v45  ;;  %v1152_v45 = vadd.f32 %v1038_v29, %v1012_v14  ;;  %vm375_vm0 = vcmp.eq.s32.totalorder %v1154_v49, %v1061_v37  ;;  %v402_v49 = vadd.s32 88, %v1026_v24 }
  0xc2   :  { %v268_v60 = vsub.f32 %v236_v30, %v252_v52 }
  0xc3   :  { %v280_v59 = vmax.f32 %v264_v51, 0.0 }
  0xc4   :  { %v284_v5 = vmax.f32 %v268_v60, 0.0 }
  0xc5   :  { %v460_v2 = vsel %vm1125_vm6, %v280_v59, 0.0  ;;  %v476_v3 = vsel %vm1125_vm6, %v280_v59, inf  ;;  %v616_v4 = vsel %vm362_vm2, inf, %v280_v59  ;;  %v108_v6 = vpop.f32.mrf.mxu2  ;;  %vm1192_vm2 = vmand %vm363_vm3, %vm429_vm4  ;;  %vm30_vm6 = vcmp.eq.s32.totalorder %v1026_v24, 1 }
  0xc6   :  { %v256_v8 = vmul.f32 2.0, %v108_v6  ;;  %v120_v9 = vpop.f32.mrf.mxu3  ;;  %v87_v10 = vpop.f32.mrf.mxu0  ;;  %v464_v11 = vsel %vm448_vm7, %v284_v5, 0.0  ;;  %v480_v12 = vsel %vm448_vm7, %v284_v5, inf  ;;  %v620_v13 = vsel %vm366_vm5, inf, %v284_v5  ;;  %vm1217_vm4 = vmand %vm367_vm13, %vm433_vm10 }
  0xc7   :  { %v260_v15 = vmul.f32 2.0, %v120_v9  ;;  %v592_v22 = vmax.f32 %v460_v2, %v464_v11  ;;  %v632_v27 = vmin.f32 %v616_v4, %v620_v13  ;;  %v656_v30 = vmin.f32 %v476_v3, %v480_v12  ;;  %v99_v40 = vpop.f32.mrf.mxu1 }
  0xc8   :  { %v272_v36 = vsub.f32 %v1045_v32, %v256_v8  ;;  %v249_v20 = vmul.f32 2.0, %v87_v10  ;;  %v253_v59 = vmul.f32 2.0, %v99_v40  ;;  %vm371_vm5 = vcmp.eq.s32.totalorder %v1066_v39, %v1061_v37  ;;  %v1309_v47 = vpop.permute.xlu0 %356 }
  0xc9   :  { %v276_v51 = vsub.f32 %v244_v63, %v260_v15  ;;  %v1199_v3 = vadd.s32 112, %v1026_v24  ;;  %vm31_vm7 = vcmp.eq.s32.totalorder %v1026_v24, 2  ;;  %vm364_vm10 = vcmp.eq.s32.totalorder %v1022_v21, %v1061_v37 }
  0xca   :  { %v288_v52 = vmax.f32 %v272_v36, 0.0  ;;  %v265_v60 = vsub.f32 %v1080_v46, %v249_v20  ;;  %v269_v2 = vsub.f32 %v1042_v31, %v253_v59  ;;  %vm1241_vm9 = vmor %vm30_vm6, %vm31_vm7  ;;  %vm435_vm6 = vcmp.ne.s32.totalorder %v1064_v38, %v1030_v26 }
  0xcb   :  { %v1172_v32 = vmax.f32 %v276_v51, 0.0 }
  0xcc   :  { %v468_v55 = vsel %vm1167_vm14, %v288_v52, 0.0  ;;  %v484_v63 = vsel %vm1167_vm14, %v288_v52, inf  ;;  %v624_v0 = vsel %vm370_vm8, inf, %v288_v52  ;;  %vm1207_vm8 = vmand %vm374_vm15, %vm440_vm12  ;;  %v281_v4 = vmax.f32 %v265_v60, 0.0 }
  0xcd   :  { %v111_v58 = vpop.f32.mrf.mxu2  ;;  %v596_v33 = vmax.f32 %v592_v22, %v468_v55  ;;  %v285_v5 = vmax.f32 %v269_v2, 0.0  ;;  %v1223_v10 = vmin.f32 %v632_v27, %v624_v0  ;;  %v660_v11 = vmin.f32 %v656_v30, %v484_v63 }
  0xce   :  { %v123_v6 = vpop.f32.mrf.mxu3  ;;  %v90_v8 = vpop.f32.mrf.mxu0  ;;  %v472_v12 = vsel %vm1207_vm8, %v1172_v32, 0.0  ;;  %v257_v13 = vmul.f32 2.0, %v111_v58  ;;  %v488_v57 = vsel %vm1207_vm8, %v1172_v32, inf  ;;  %v461_v15 = vsel %vm1192_vm2, %v281_v4, 0.0 }
  0xcf   :  { %v477_v22 = vsel %vm1192_vm2, %v281_v4, inf  ;;  %v465_v27 = vsel %vm1217_vm4, %v285_v5, 0.0  ;;  %v102_v36 = vpop.f32.mrf.mxu1  ;;  %vm430_vm12 = vcmp.ne.s32.totalorder %v1092_v50, %v1030_v26  ;;  %v617_v40 = vsel %vm363_vm3, inf, %v281_v4  ;;  %vm1273_vm3 = vmand %vm371_vm5, %vm437_vm11 }
  0xd0   :  { %v481_v51 = vsel %vm1217_vm4, %v285_v5, inf  ;;  %v621_v20 = vsel %vm367_vm13, inf, %v285_v5  ;;  %v273_v52 = vsub.f32 %v1117_v62, %v257_v13  ;;  %vm434_vm14 = vcmp.ne.s32.totalorder %v1108_v56, %v1030_v26  ;;  %vm457_vm2 = vmand %vm375_vm0, %vm441_vm1  ;;  %v360_v62 = vpop.permute.xlu1 %359 }
  0xd1   :  { %v1260_v59 = vmax.f32 %v596_v33, %v472_v12  ;;  %v628_v14 = vsel %vm374_vm15, inf, %v1172_v32  ;;  %v261_v17 = vmul.f32 2.0, %v123_v6  ;;  %v250_v60 = vmul.f32 2.0, %v90_v8  ;;  %vm1335_vm7 = vmand %vm364_vm10, %vm430_vm12 }
  0xd2   :  { %v593_v55 = vmax.f32 %v461_v15, %v465_v27  ;;  %v289_v63 = vmax.f32 %v273_v52, 0.0  ;;  %v254_v0 = vmul.f32 2.0, %v102_v36  ;;  %v783_v2 = vmov 0.0  }
  0xd3   :  { %v33_v28 = vsel %vm1241_vm9, inf, %v783_v2  ;;  %v633_v16 = vmin.f32 %v617_v40, %v621_v20  ;;  %v657_v32 = vmin.f32 %v477_v22, %v481_v51  ;;  %v277_v46 = vsub.f32 %v1152_v45, %v261_v17 }
  0xd4   :  { %v266_v58 = vsub.f32 %v1055_v35, %v250_v60  ;;  %34 = vst [vmem:[#allocation2] sm:$0xff] %v33_v28  ;;  %vm372_vm13 = vcmp.eq.s32.totalorder %v1074_v43, %v1061_v37  ;;  %vm438_vm15 = vcmp.ne.s32.totalorder %v1077_v44, %v1030_v26  ;;  %v469_v1 = vsel %vm1273_vm3, %v289_v63, 0.0 }
  0xd5   :  { %v485_v31 = vsel %vm1273_vm3, %v289_v63, inf  ;;  %v625_v33 = vsel %vm371_vm5, inf, %v289_v63  ;;  %v270_v45 = vsub.f32 %v1102_v54, %v254_v0  ;;  %v114_v35 = vpop.f32.mrf.mxu2  ;;  %vm431_vm11 = vcmp.ne.s32.totalorder %v1088_v48, %v1030_v26 }
  0xd6   :  { %v597_v4 = vmax.f32 %v593_v55, %v469_v1  ;;  %v637_v5 = vmin.f32 %v633_v16, %v625_v33  ;;  %v661_v6 = vmin.f32 %v657_v32, %v485_v31  ;;  %v293_v8 = vmax.f32 %v277_v46, 0.0  ;;  %v126_v9 = vpop.f32.mrf.mxu3  ;;  %v93_v12 = vpop.f32.mrf.mxu0 }
  0xd7   :  { %v640_v39 = vmin.f32 %v1223_v10, %v628_v14  ;;  %v1300_v54 = vmin.f32 %v660_v11, %v488_v57  ;;  %v282_v13 = vmax.f32 %v266_v58, 0.0  ;;  %v258_v15 = vmul.f32 2.0, %v114_v35  ;;  %v105_v52 = vpop.f32.mrf.mxu1 }
  0xd8   :  { %v473_v22 = vsel %vm457_vm2, %v293_v8, 0.0  ;;  %v489_v27 = vsel %vm457_vm2, %v293_v8, inf  ;;  %v629_v36 = vsel %vm375_vm0, inf, %v293_v8  ;;  %v262_v30 = vmul.f32 2.0, %v126_v9 }
  0xd9   :  { %vm369_vm5 = vcmp.eq.s32.totalorder %v1028_v25, %v1061_v37  ;;  %v1311_v10 = vmax.f32 %v597_v4, %v473_v22  ;;  %v641_v11 = vmin.f32 %v637_v5, %v629_v36  ;;  %v1313_v57 = vmin.f32 %v661_v6, %v489_v27 }
  0xda   :  { %v251_v40 = vmul.f32 2.0, %v93_v12  ;;  %vm368_vm1 = vcmp.eq.s32.totalorder %v1024_v23, %v1061_v37  ;;  %v1319_v51 = vadd.s32 120, %v1026_v24  ;;  %v286_v20 = vmax.f32 %v270_v45, 0.0 }
  0xdb   :  { %vm365_vm0 = vcmp.eq.s32.totalorder %v1018_v19, %v1061_v37  ;;  %v604_v14 = vmax.f32 %v1260_v59, %v1311_v10  ;;  %v1325_v17 = vmin.f32 %v640_v39, %v641_v11  ;;  %v668_v60 = vmin.f32 %v1300_v54, %v1313_v57  ;;  %vm1351_vm9 = vmand %vm368_vm1, %vm434_vm14 }
  0xdc   :  { %vm376_vm8 = vcmp.eq.s32.totalorder %v1309_v47, %v1061_v37  ;;  %vm442_vm4 = vcmp.ne.s32.totalorder %v1199_v3, %v1030_v26  ;;  %v274_v55 = vsub.f32 %v1114_v61, %v258_v15  ;;  %v278_v63 = vsub.f32 %v1069_v41, %v262_v30  ;;  %vm1390_vm14 = vmand %vm365_vm0, %vm431_vm11 }
  0xdd   :  { %v462_v0 = vsel %vm1335_vm7, %v282_v13, 0.0  ;;  %v478_v2 = vsel %vm1335_vm7, %v282_v13, inf  ;;  %v267_v61 = vsub.f32 %v1072_v42, %v251_v40  ;;  %v255_v28 = vmul.f32 2.0, %v105_v52  ;;  %v117_v41 = vpop.f32.mrf.mxu2  ;;  %vm1426_vm11 = vmand %vm369_vm5, %vm435_vm6 }
  0xde   :  { %v618_v56 = vsel %vm364_vm10, inf, %v282_v13  ;;  %v466_v16 = vsel %vm1351_vm9, %v286_v20, 0.0  ;;  %v482_v32 = vsel %vm1351_vm9, %v286_v20, inf  ;;  %v290_v46 = vmax.f32 %v274_v55, 0.0  ;;  %v129_v58 = vpop.f32.mrf.mxu3  ;;  %vm1377_vm10 = vmand %vm372_vm13, %vm438_vm15 }
  0xdf   :  { %v622_v1 = vsel %vm368_vm1, inf, %v286_v20  ;;  %v294_v42 = vmax.f32 %v278_v63, 0.0  ;;  %v283_v31 = vmax.f32 %v267_v61, 0.0  ;;  %v271_v33 = vsub.f32 %v1099_v53, %v255_v28  ;;  %vm1405_vm1 = vmand %vm376_vm8, %vm442_vm4 }
  0xe0   :  { %v247_v45 = vadd.f32 %v1038_v29, %v1016_v18  ;;  %vm439_vm12 = vcmp.ne.s32.totalorder %v402_v49, %v1030_v26  ;;  %v259_v23 = vmul.f32 2.0, %v117_v41  ;;  %v263_v35 = vmul.f32 2.0, %v129_v58 }
  0xe1   :  { %vm373_vm3 = vcmp.eq.s32.totalorder %v1221_v7, %v1061_v37  ;;  %vm377_vm15 = vcmp.eq.s32.totalorder %v360_v62, %v1061_v37  ;;  %vm443_vm2 = vcmp.ne.s32.totalorder %v1319_v51, %v1030_v26  ;;  %v594_v18 = vmax.f32 %v462_v0, %v466_v16 }
  0xe2   :  { %v634_v48 = vmin.f32 %v618_v56, %v622_v1  ;;  %v658_v53 = vmin.f32 %v478_v2, %v482_v32  ;;  %v470_v4 = vsel %vm1377_vm10, %v290_v46, 0.0  ;;  %v486_v5 = vsel %vm1377_vm10, %v290_v46, inf }
  0xe3   :  { %v626_v6 = vsel %vm372_vm13, inf, %v290_v46  ;;  %v474_v3 = vsel %vm1405_vm1, %v294_v42, 0.0  ;;  %v463_v8 = vsel %vm1390_vm14, %v283_v31, 0.0  ;;  %v287_v9 = vmax.f32 %v271_v33, 0.0  ;;  %vm455_vm13 = vmand %vm373_vm3, %vm439_vm12 }
  0xe4   :  { %v479_v43 = vsel %vm1390_vm14, %v283_v31, inf  ;;  %v619_v39 = vsel %vm365_vm0, inf, %v283_v31  ;;  %v275_v13 = vsub.f32 %v1052_v34, %v259_v23  ;;  %v279_v15 = vsub.f32 %v247_v45, %v263_v35 }
  0xe5   :  { %v598_v22 = vmax.f32 %v594_v18, %v470_v4  ;;  %v467_v38 = vsel %vm1426_vm11, %v287_v9, 0.0  ;;  %v483_v27 = vsel %vm1426_vm11, %v287_v9, inf  ;;  %v623_v36 = vsel %vm369_vm5, inf, %v287_v9  ;;  %vm459_vm5 = vmand %vm377_vm15, %vm443_vm2  ;;  %v615_v4 = vld [vmem:[#allocation2 + $0x1] sm:$0x1] }
  0xe6   :  { %v638_v30 = vmin.f32 %v634_v48, %v626_v6  ;;  %v662_v11 = vmin.f32 %v658_v53, %v486_v5  ;;  %v490_v19 = vsel %vm1405_vm1, %v294_v42, inf  ;;  %v291_v40 = vmax.f32 %v275_v13, 0.0  ;;  %v655_v5 = vld [vmem:[#allocation2 + $0x2] sm:$0x1] }
  0xe7   :  { %v595_v34 = vmax.f32 %v463_v8, %v467_v38  ;;  %v635_v20 = vmin.f32 %v619_v39, %v623_v36  ;;  %v659_v52 = vmin.f32 %v479_v43, %v483_v27  ;;  %v295_v24 = vmax.f32 %v279_v15, 0.0 }
  0xe8   :  { %v630_v25 = vsel %vm376_vm8, inf, %v294_v42  ;;  %v471_v55 = vsel %vm455_vm13, %v291_v40, 0.0  ;;  %v487_v63 = vsel %vm455_vm13, %v291_v40, inf  ;;  %v627_v50 = vsel %vm373_vm3, inf, %v291_v40 }
  0xe9   :  { %v602_v49 = vmax.f32 %v598_v22, %v474_v3  ;;  %v599_v0 = vmax.f32 %v595_v34, %v471_v55  ;;  %v639_v2 = vmin.f32 %v635_v20, %v627_v50  ;;  %v663_v61 = vmin.f32 %v659_v52, %v487_v63 }
  0xea   :  { %v642_v28 = vmin.f32 %v638_v30, %v630_v25  ;;  %v475_v41 = vsel %vm459_vm5, %v295_v24, 0.0  ;;  %v491_v47 = vsel %vm459_vm5, %v295_v24, inf  ;;  %v631_v56 = vsel %vm377_vm15, inf, %v295_v24 }
  0xeb   :  { %v666_v16 = vmin.f32 %v662_v11, %v490_v19  ;;  %v603_v32 = vmax.f32 %v599_v0, %v475_v41  ;;  %v643_v7 = vmin.f32 %v639_v2, %v631_v56  ;;  %v667_v46 = vmin.f32 %v663_v61, %v491_v47 }
  0xed   :  { %v605_v58 = vmax.f32 %v602_v49, %v603_v32  ;;  %v645_v1 = vmin.f32 %v642_v28, %v643_v7  ;;  %v669_v26 = vmin.f32 %v666_v16, %v667_v46 }
  0xef   :  { %v606_v51 = vmax.f32 %v604_v14, %v605_v58  ;;  %v646_v42 = vmin.f32 %v1325_v17, %v645_v1  ;;  %v670_v31 = vmin.f32 %v668_v60, %v669_v26  ;;  %v591_v17 = vld [vmem:[#allocation2] sm:$0x1] }
  0xf1   :  { %v607_v33 = vrot.slane %v606_v51, 4  ;;  %v647_v37 = vrot.slane %v646_v42, 4  ;;  %v671_v62 = vrot.slane %v670_v31, 4 }
  0xf3   :  { %v608_v21 = vmax.f32 %v606_v51, %v607_v33  ;;  %v648_v45 = vmin.f32 %v646_v42, %v647_v37  ;;  %v672_v23 = vmin.f32 %v670_v31, %v671_v62 }
  0xf5   :  { %v609_v35 = vrot.slane %v608_v21, 2  ;;  %v649_v44 = vrot.slane %v648_v45, 2  ;;  %v673_v18 = vrot.slane %v672_v23, 2 }
  0xf7   :  { %v610_v29 = vmax.f32 %v608_v21, %v609_v35  ;;  %v650_v48 = vmin.f32 %v648_v45, %v649_v44  ;;  %v674_v53 = vmin.f32 %v672_v23, %v673_v18 }
  0xf9   :  { %v611_v59 = vrot.slane %v610_v29, 1  ;;  %v651_v10 = vrot.slane %v650_v48, 1  ;;  %v675_v14 = vrot.slane %v674_v53, 1 }
  0xfb   :  { %v612_v54 = vmax.f32 %v610_v29, %v611_v59  ;;  %v652_v57 = vmin.f32 %v650_v48, %v651_v10  ;;  %v676_v60 = vmin.f32 %v674_v53, %v675_v14 }
  0xfd   :  { %v613_v6 = vmax.f32 %v591_v17, %v612_v54  ;;  %v653_v3 = vmin.f32 %v615_v4, %v652_v57  ;;  %v677_v8 = vmin.f32 %v655_v5, %v676_v60 }
  0xff   :  { %614 = vst [vmem:[#allocation2] sm:$0x1] %v613_v6 }
 0x100   :  { %654 = vst [vmem:[#allocation2 + $0x1] sm:$0x1] %v653_v3 }
 0x101   :  { %678 = vst [vmem:[#allocation2 + $0x2] sm:$0x1] %v677_v8 }
 0x108   :  { %v682_v9 = vld [vmem:[#allocation2] sm:$0xff] }
 0x109   :  { %683 = vst [vmem:[#allocation3] sm:$0xff] %v682_v9 }
 0x10a   :  { %694 = dma.vmem_to_hbm [thread:$0]  %s690_s25, 128, %s692_s28, [#allocation4]  }
 0x10b   :  { %780 = dma.done.wait [#allocation4], 128  }
 0x10c   :  { %781 = vsyncadd [#allocation4], 4294967168 }
 0x10d   :  { %699 = vsyncpa [#allocation4], 1 }

</bundles_post_ra>
